<compile_context>
chip_gen: v7x
topology: tpu7x:2x2x1
jax: 0.10.0
libtpu: 0.0.40
codegen_flags: <defaults>
</compile_context>

<pallas_src>
import numpy as np
import jax
import jax.numpy as jnp
from jax.experimental import pallas as pl
from jax.experimental.pallas import tpu as pltpu

LANE = 128
SUBLANE = 8


def _round_up(v, m):
    return ((v + m - 1) // m) * m


def _vmem_capacity_bytes():
    """Physical VMEM per TensorCore; conservative (v7x, 64 MiB) fallback."""
    try:
        return int(pltpu.get_tpu_info().vmem_capacity_bytes)
    except Exception:
        return 64 * 1024 * 1024


def _param_block_spec(shape):
    """VMEM-resident parameter: constant index_map + single pipeline buffer."""
    try:
        return pl.BlockSpec(shape, lambda i: (0, 0),
                            pipeline_mode=pl.Buffered(buffer_count=1))
    except Exception:  # older BlockSpec without pipeline_mode -> default (2 bufs)
        return pl.BlockSpec(shape, lambda i: (0, 0))


def _make_mlp_kernel(num_layers):
    """Fused Linear -> LeakyReLU(0.01) -> ... -> Linear (no activation after last)."""

    def kernel(*refs):
        # refs = (x_ref, w0, b0, w1, b1, ..., out_ref); one batch tile per grid step.
        x_ref = refs[0]
        out_ref = refs[-1]
        wb = refs[1:-1]
        h = x_ref[...]                                    # (TILE_B, in_pad), matmul dtype
        for i in range(num_layers):
            w = wb[2 * i][...]                            # (in_pad_i, out_pad_i)
            b = wb[2 * i + 1][...]                        # (1, out_pad_i), f32
            hd = h if h.dtype == w.dtype else h.astype(w.dtype)   # cast only at dot boundary
            h = jnp.dot(hd, w, preferred_element_type=jnp.float32) + b
            if i < num_layers - 1:
                h = jnp.maximum(h, 0.01 * h)              # LeakyReLU(0.01), f32 VPU
        out_ref[...] = h.astype(out_ref.dtype)            # lane-dense (>=128) store

    return kernel


def prepare_autoencoder_params(weights, biases, matmul_dtype=jnp.bfloat16):
    """Pad feature dims to 128 lanes and cast weights once (hoisted out of forward).

    weights: list of (in_i, out_i) arrays (already transposed vs. PyTorch (out, in))
    biases:  list of (1, out_i) arrays
    returns: (w_pad_list, b_pad_list, out_dim)
    """
    w_pad, b_pad = [], []
    for w, b in zip(weights, biases):
        fi, fo = w.shape
        fi_p, fo_p = _round_up(fi, LANE), _round_up(fo, LANE)
        wp = jnp.zeros((fi_p, fo_p), matmul_dtype).at[:fi, :fo].set(w.astype(matmul_dtype))
        bp = jnp.zeros((1, fo_p), jnp.float32).at[:, :fo].set(
            jnp.reshape(b, (1, fo)).astype(jnp.float32))
        w_pad.append(wp)
        b_pad.append(bp)
    return w_pad, b_pad, int(weights[-1].shape[1])


def autoencoder_forward(x, w_pad, b_pad, out_dim):
    """Fused autoencoder forward on pre-padded params. x: (batch, input_dim) f32."""
    num_layers = len(w_pad)
    batch, in_dim = x.shape
    in_pad = w_pad[0].shape[0]
    out_pad = w_pad[-1].shape[1]
    act_dtype = w_pad[0].dtype

    # ---- generation-aware VMEM budget (~80% of physical per-TC capacity) ----
    vmem_cap = _vmem_capacity_bytes()
    vmem_limit = int(0.8 * vmem_cap)

    param_bytes = sum(int(np.prod(a.shape)) * a.dtype.itemsize for a in (w_pad + b_pad))
    max_feat = max(w.shape[1] for w in w_pad)
    per_row_bytes = (2 * in_pad * act_dtype.itemsize      # double-buffered input tile (bf16)
                     + 2 * out_pad * 4                    # double-buffered f32 output tile
                     + 3 * max_feat * 4)                  # live f32 intermediates
    headroom = 4 * 1024 * 1024
    act_budget = vmem_limit - param_bytes - headroom
    # TODO(synk): if act_budget < 0 (very deep/wide autoencoder, esp. v7x 64 MiB),
    # the all-weights-resident plan should be replaced by streaming the largest
    # layers over an extra "arbitrary" grid axis; not needed at these sizes.
    max_rows = max(SUBLANE, (max(act_budget, 0) // per_row_bytes) // SUBLANE * SUBLANE)

    # ---- batch tiling: largest tile the budget allows (<=1024 rows), but keep
    # >=2 grid steps when possible so v7x's 2 TensorCores both get work ----
    batch_su = _round_up(max(batch, 1), SUBLANE)
    if batch_su <= SUBLANE:
        tile_b = batch_su
    else:
        half = _round_up(batch_su // 2, SUBLANE)
        tile_b = int(max(SUBLANE, min(1024, half, max_rows)))
    batch_p = _round_up(max(batch, 1), tile_b)
    nb = batch_p // tile_b

    # ---- pad batch; activations travel in matmul dtype (halves per-step DMA) ----
    x_p = jnp.zeros((batch_p, in_pad), act_dtype).at[:batch, :in_dim].set(x.astype(act_dtype))

    x_spec = pl.BlockSpec((tile_b, in_pad), lambda i: (i, 0))
    out_spec = pl.BlockSpec((tile_b, out_pad), lambda i: (i, 0))
    wb_args, wb_specs = [], []
    for wp, bp in zip(w_pad, b_pad):
        wb_args += [wp, bp]
        wb_specs += [_param_block_spec(wp.shape), _param_block_spec(bp.shape)]

    y_p = pl.pallas_call(
        _make_mlp_kernel(num_layers),
        out_shape=jax.ShapeDtypeStruct((batch_p, out_pad), jnp.float32),
        grid_spec=pltpu.PrefetchScalarGridSpec(
            num_scalar_prefetch=0,
            grid=(nb,),
            in_specs=[x_spec] + wb_specs,
            out_specs=out_spec,
        ),
        compiler_params=pltpu.CompilerParams(
            dimension_semantics=("parallel",),
            vmem_limit_bytes=vmem_limit,
        ),
    )(x_p, *wb_args)

    return y_p[:batch, :out_dim].astype(x.dtype)


def build_autoencoder_params(input_dim, code_dim, steps, key):
    """Parameters implied by AutoEncoder.__init__/build_recursive.

    dims = linspace(input_dim, code_dim, steps+1, dtype=int)
    encoder: Linear(dims[i], dims[i+1]) for i = 0..steps-1   (each followed by LeakyReLU)
    decoder: Linear(dims[i+1], dims[i]) for i = steps-1..0   (LeakyReLU between, none after last)
    """
    dims = np.linspace(input_dim, code_dim, steps + 1, dtype=int)
    layer_dims = []
    for i in range(steps):
        layer_dims.append((int(dims[i]), int(dims[i + 1])))
    for i in range(steps - 1, -1, -1):
        layer_dims.append((int(dims[i + 1]), int(dims[i])))

    weights, biases = [], []
    for (fan_in, fan_out) in layer_dims:
        key, kw, kb = jax.random.split(key, 3)
        bound = 1.0 / np.sqrt(fan_in)  # PyTorch Linear default init range
        w = jax.random.uniform(kw, (fan_in, fan_out), jnp.float32, -bound, bound)
        b = jax.random.uniform(kb, (1, fan_out), jnp.float32, -bound, bound)
        weights.append(w)
        biases.append(b)
    return weights, biases


def reference_forward(x, weights, biases, matmul_dtype=jnp.float32):
    """Pure-JAX reference matching PyTorch forward semantics.

    With matmul_dtype=bfloat16 it applies the same cast points as the kernel.
    """
    h = x.astype(jnp.float32)
    n = len(weights)
    for i, (w, b) in enumerate(zip(weights, biases)):
        h = jnp.dot(h.astype(matmul_dtype), w.astype(matmul_dtype),
                    preferred_element_type=jnp.float32) + b.astype(jnp.float32)
        if i < n - 1:
            h = jnp.where(h > 0, h, 0.01 * h)
    return h


if __name__ == "__main__":
    # Small shapes consistent with the module: AutoEncoder(input_dim=32, code_dim=8, steps=2)
    input_dim, code_dim, steps = 32, 8, 2
    batch = 8

    key = jax.random.PRNGKey(0)
    key, kx = jax.random.split(key)
    x = jax.random.normal(kx, (batch, input_dim), dtype=jnp.float32)

    weights, biases = build_autoencoder_params(input_dim, code_dim, steps, key)

    # Hoisted once (perf feedback): pad + bf16-cast parameters outside the forward.
    w_pad, b_pad, out_dim = prepare_autoencoder_params(weights, biases)

    y = autoencoder_forward(x, w_pad, b_pad, out_dim)
    y = jax.block_until_ready(y)
    assert y.shape == (batch, input_dim), y.shape

    # Tight check vs. a reference with the same bf16 cast points (f32 accumulation).
    y_ref_bf16 = reference_forward(x, weights, biases, matmul_dtype=jnp.bfloat16)
    assert jnp.allclose(y, y_ref_bf16, atol=2e-3, rtol=2e-3), "mismatch vs bf16 reference"

    # Loose sanity check vs. the pure-f32 PyTorch-equivalent forward.
    y_ref_f32 = reference_forward(x, weights, biases, matmul_dtype=jnp.float32)
    assert jnp.allclose(y, y_ref_f32, atol=5e-2, rtol=5e-2), "mismatch vs f32 reference"

    # TODO(synk): fit()/calculate_intermidiate() are host-side training/data-loader
    # utilities; only the forward pass is implemented as a kernel.
    print("KERNEL_OK")
</pallas_src>

<mosaic_0001>
module attributes {stable_mosaic.version = 11 : i64} {
  func.func @kernel(%arg0: i32, %arg1: memref<8x128xbf16, #tpu.memory_space<vmem>>, %arg2: memref<128x128xbf16, #tpu.memory_space<vmem>>, %arg3: memref<1x128xf32, #tpu.memory_space<vmem>>, %arg4: memref<128x128xbf16, #tpu.memory_space<vmem>>, %arg5: memref<1x128xf32, #tpu.memory_space<vmem>>, %arg6: memref<128x128xbf16, #tpu.memory_space<vmem>>, %arg7: memref<1x128xf32, #tpu.memory_space<vmem>>, %arg8: memref<128x128xbf16, #tpu.memory_space<vmem>>, %arg9: memref<1x128xf32, #tpu.memory_space<vmem>>, %arg10: memref<8x128xf32, #tpu.memory_space<vmem>>) attributes {dimension_semantics = [#tpu.dimension_semantics<parallel>], iteration_bounds = array<i64: 1>, scalar_prefetch = 0 : i64, scratch_operands = 0 : i64, tpu.core_type = #tpu.core_type<tc>, window_params = [{transform_indices = @transform_0, window_bounds = array<i64: 8, 128>}, {pipeline_mode = #tpu.pipeline_mode<synchronous>, transform_indices = @transform_1, window_bounds = array<i64: 128, 128>}, {pipeline_mode = #tpu.pipeline_mode<synchronous>, transform_indices = @transform_2, window_bounds = array<i64: 1, 128>}, {pipeline_mode = #tpu.pipeline_mode<synchronous>, transform_indices = @transform_3, window_bounds = array<i64: 128, 128>}, {pipeline_mode = #tpu.pipeline_mode<synchronous>, transform_indices = @transform_4, window_bounds = array<i64: 1, 128>}, {pipeline_mode = #tpu.pipeline_mode<synchronous>, transform_indices = @transform_5, window_bounds = array<i64: 128, 128>}, {pipeline_mode = #tpu.pipeline_mode<synchronous>, transform_indices = @transform_6, window_bounds = array<i64: 1, 128>}, {pipeline_mode = #tpu.pipeline_mode<synchronous>, transform_indices = @transform_7, window_bounds = array<i64: 128, 128>}, {pipeline_mode = #tpu.pipeline_mode<synchronous>, transform_indices = @transform_8, window_bounds = array<i64: 1, 128>}, {transform_indices = @transform_9, window_bounds = array<i64: 8, 128>}]} {
    %c0 = arith.constant 0 : index
    %c0_0 = arith.constant 0 : index
    %0 = vector.load %arg1[%c0, %c0_0] : memref<8x128xbf16, #tpu.memory_space<vmem>>, vector<8x128xbf16>
    %c0_1 = arith.constant 0 : index
    %c0_2 = arith.constant 0 : index
    %1 = vector.load %arg2[%c0_1, %c0_2] : memref<128x128xbf16, #tpu.memory_space<vmem>>, vector<128x128xbf16>
    %c0_3 = arith.constant 0 : index
    %c0_4 = arith.constant 0 : index
    %2 = vector.load %arg3[%c0_3, %c0_4] : memref<1x128xf32, #tpu.memory_space<vmem>>, vector<1x128xf32>
    %cst = arith.constant dense<0.000000e+00> : vector<8x128xf32>
    %3 = tpu.matmul %0, %1, %cst {dimension_numbers = #tpu.dot_dimension_numbers<[1], [0], [0], [1], [0, 0, 1, 1], [], []>} : vector<8x128xbf16>, vector<128x128xbf16>, vector<8x128xf32> -> vector<8x128xf32>
    %4 = vector.broadcast %2 : vector<1x128xf32> to vector<8x128xf32>
    %5 = arith.addf %3, %4 : vector<8x128xf32>
    %cst_5 = arith.constant 0.00999999977 : f32
    %6 = vector.broadcast %cst_5 : f32 to vector<8x128xf32>
    %7 = arith.mulf %6, %5 : vector<8x128xf32>
    %8 = arith.maximumf %5, %7 : vector<8x128xf32>
    %c0_6 = arith.constant 0 : index
    %c0_7 = arith.constant 0 : index
    %9 = vector.load %arg4[%c0_6, %c0_7] : memref<128x128xbf16, #tpu.memory_space<vmem>>, vector<128x128xbf16>
    %c0_8 = arith.constant 0 : index
    %c0_9 = arith.constant 0 : index
    %10 = vector.load %arg5[%c0_8, %c0_9] : memref<1x128xf32, #tpu.memory_space<vmem>>, vector<1x128xf32>
    %11 = arith.truncf %8 : vector<8x128xf32> to vector<8x128xbf16>
    %cst_10 = arith.constant dense<0.000000e+00> : vector<8x128xf32>
    %12 = tpu.matmul %11, %9, %cst_10 {dimension_numbers = #tpu.dot_dimension_numbers<[1], [0], [0], [1], [0, 0, 1, 1], [], []>} : vector<8x128xbf16>, vector<128x128xbf16>, vector<8x128xf32> -> vector<8x128xf32>
    %13 = vector.broadcast %10 : vector<1x128xf32> to vector<8x128xf32>
    %14 = arith.addf %12, %13 : vector<8x128xf32>
    %cst_11 = arith.constant 0.00999999977 : f32
    %15 = vector.broadcast %cst_11 : f32 to vector<8x128xf32>
    %16 = arith.mulf %15, %14 : vector<8x128xf32>
    %17 = arith.maximumf %14, %16 : vector<8x128xf32>
    %c0_12 = arith.constant 0 : index
    %c0_13 = arith.constant 0 : index
    %18 = vector.load %arg6[%c0_12, %c0_13] : memref<128x128xbf16, #tpu.memory_space<vmem>>, vector<128x128xbf16>
    %c0_14 = arith.constant 0 : index
    %c0_15 = arith.constant 0 : index
    %19 = vector.load %arg7[%c0_14, %c0_15] : memref<1x128xf32, #tpu.memory_space<vmem>>, vector<1x128xf32>
    %20 = arith.truncf %17 : vector<8x128xf32> to vector<8x128xbf16>
    %cst_16 = arith.constant dense<0.000000e+00> : vector<8x128xf32>
    %21 = tpu.matmul %20, %18, %cst_16 {dimension_numbers = #tpu.dot_dimension_numbers<[1], [0], [0], [1], [0, 0, 1, 1], [], []>} : vector<8x128xbf16>, vector<128x128xbf16>, vector<8x128xf32> -> vector<8x128xf32>
    %22 = vector.broadcast %19 : vector<1x128xf32> to vector<8x128xf32>
    %23 = arith.addf %21, %22 : vector<8x128xf32>
    %cst_17 = arith.constant 0.00999999977 : f32
    %24 = vector.broadcast %cst_17 : f32 to vector<8x128xf32>
    %25 = arith.mulf %24, %23 : vector<8x128xf32>
    %26 = arith.maximumf %23, %25 : vector<8x128xf32>
    %c0_18 = arith.constant 0 : index
    %c0_19 = arith.constant 0 : index
    %27 = vector.load %arg8[%c0_18, %c0_19] : memref<128x128xbf16, #tpu.memory_space<vmem>>, vector<128x128xbf16>
    %c0_20 = arith.constant 0 : index
    %c0_21 = arith.constant 0 : index
    %28 = vector.load %arg9[%c0_20, %c0_21] : memref<1x128xf32, #tpu.memory_space<vmem>>, vector<1x128xf32>
    %29 = arith.truncf %26 : vector<8x128xf32> to vector<8x128xbf16>
    %cst_22 = arith.constant dense<0.000000e+00> : vector<8x128xf32>
    %30 = tpu.matmul %29, %27, %cst_22 {dimension_numbers = #tpu.dot_dimension_numbers<[1], [0], [0], [1], [0, 0, 1, 1], [], []>} : vector<8x128xbf16>, vector<128x128xbf16>, vector<8x128xf32> -> vector<8x128xf32>
    %31 = vector.broadcast %28 : vector<1x128xf32> to vector<8x128xf32>
    %32 = arith.addf %30, %31 : vector<8x128xf32>
    %c0_23 = arith.constant 0 : index
    %c0_24 = arith.constant 0 : index
    %33 = vector.load %arg10[%c0_23, %c0_24] : memref<8x128xf32, #tpu.memory_space<vmem>>, vector<8x128xf32>
    tpu.vector_store %arg10[%c0_23, %c0_24], %32 {strides = array<i32>} : memref<8x128xf32, #tpu.memory_space<vmem>>, vector<8x128xf32>,
    return
  }
  func.func @transform_0(%arg0: i32) -> (i32, i32) {
    %c0_i32 = arith.constant 0 : i32
    %c0_i32_0 = arith.constant 0 : i32
    return %arg0, %c0_i32 : i32, i32
  }
  func.func @transform_1(%arg0: i32) -> (i32, i32) {
    %c0_i32 = arith.constant 0 : i32
    %c0_i32_0 = arith.constant 0 : i32
    %c0_i32_1 = arith.constant 0 : i32
    return %c0_i32, %c0_i32_0 : i32, i32
  }
  func.func @transform_2(%arg0: i32) -> (i32, i32) {
    %c0_i32 = arith.constant 0 : i32
    %c0_i32_0 = arith.constant 0 : i32
    %c0_i32_1 = arith.constant 0 : i32
    return %c0_i32, %c0_i32_0 : i32, i32
  }
  func.func @transform_3(%arg0: i32) -> (i32, i32) {
    %c0_i32 = arith.constant 0 : i32
    %c0_i32_0 = arith.constant 0 : i32
    %c0_i32_1 = arith.constant 0 : i32
    return %c0_i32, %c0_i32_0 : i32, i32
  }
  func.func @transform_4(%arg0: i32) -> (i32, i32) {
    %c0_i32 = arith.constant 0 : i32
    %c0_i32_0 = arith.constant 0 : i32
    %c0_i32_1 = arith.constant 0 : i32
    return %c0_i32, %c0_i32_0 : i32, i32
  }
  func.func @transform_5(%arg0: i32) -> (i32, i32) {
    %c0_i32 = arith.constant 0 : i32
    %c0_i32_0 = arith.constant 0 : i32
    %c0_i32_1 = arith.constant 0 : i32
    return %c0_i32, %c0_i32_0 : i32, i32
  }
  func.func @transform_6(%arg0: i32) -> (i32, i32) {
    %c0_i32 = arith.constant 0 : i32
    %c0_i32_0 = arith.constant 0 : i32
    %c0_i32_1 = arith.constant 0 : i32
    return %c0_i32, %c0_i32_0 : i32, i32
  }
  func.func @transform_7(%arg0: i32) -> (i32, i32) {
    %c0_i32 = arith.constant 0 : i32
    %c0_i32_0 = arith.constant 0 : i32
    %c0_i32_1 = arith.constant 0 : i32
    return %c0_i32, %c0_i32_0 : i32, i32
  }
  func.func @transform_8(%arg0: i32) -> (i32, i32) {
    %c0_i32 = arith.constant 0 : i32
    %c0_i32_0 = arith.constant 0 : i32
    %c0_i32_1 = arith.constant 0 : i32
    return %c0_i32, %c0_i32_0 : i32, i32
  }
  func.func @transform_9(%arg0: i32) -> (i32, i32) {
    %c0_i32 = arith.constant 0 : i32
    %c0_i32_0 = arith.constant 0 : i32
    return %arg0, %c0_i32 : i32, i32
  }
}

</mosaic_0001>

<bundles_post_ra>
// kernel: tpu_custom_call.1
= control target key start
LH: loop header
LB: loop body
LE: loop exit
PB: predicated region body
PF: predicated region fallthrough
CT: control target
= control target key end

     0   :  { %14 = vsyncpa [#allocation3], 0  ;;  %s1102_s0 = inlined_call_operand.hbm [shape: bf16[8,128], index: 0, kind: input, shape index: {}]   ;;  %s1103_s1 = inlined_call_operand.hbm [shape: bf16[128,128], index: 1, kind: input, shape index: {}]   ;;  %s1104_s2 = inlined_call_operand.vmem [shape: f32[1,128], index: 2, kind: input, shape index: {}]   ;;  %s1105_s3 = inlined_call_operand.hbm [shape: bf16[128,128], index: 3, kind: input, shape index: {}]   ;;  %s1106_s4 = inlined_call_operand.vmem [shape: f32[1,128], index: 4, kind: input, shape index: {}]   ;;  %s1107_s5 = inlined_call_operand.hbm [shape: bf16[128,128], index: 5, kind: input, shape index: {}]   ;;  %s1108_s6 = inlined_call_operand.vmem [shape: f32[1,128], index: 6, kind: input, shape index: {}]   ;;  %s1109_s7 = inlined_call_operand.hbm [shape: bf16[128,128], index: 7, kind: input, shape index: {}]   ;;  %s1110_s8 = inlined_call_operand.vmem [shape: f32[1,128], index: 8, kind: input, shape index: {}]   ;;  %s1111_s9 = inlined_call_operand.hbm [shape: f32[8,128], index: 9, kind: output, shape index: {}]  }
   0x1   :  { %15 = vsyncpa [#allocation6], 0 }
   0x2   :  { %16 = vsyncpa [#allocation9], 0 }
   0x3   :  { %17 = vsyncpa [#allocation4], 0  ;;  %s906_s30 = smov [#allocation5]   ;;  %s766_s13 = scalar_lea.hbm %s1103_s1, 1024 }
   0x4   :  { %s33_s10 = sshll.u32 %s906_s30, 4  ;;  %p767_p0 = scmp.ne.s32.totalorder %s1103_s1, %s766_s13  ;;  %s34_s10 = int_to_ptr.vmem [resolvable:$true] %s33_s10 }
   0x5   :  { %p770_p1 = scmp.lt.u32.totalorder %s766_s13, %s1103_s1 }
   0x7   :  { %p772_p2 = pnand %p770_p1, %p767_p0 }
   0x9   :  { %775 = shalt.err (!%p772_p2)
}
   0xa   :  { %s776_s18 = scalar_lea.vmem %s34_s10, 1024  ;;  %p781_p4 = scmp.lt.s32.totalorder %s34_s10, %s34_s10 }
   0xb   :  { %p777_p3 = scmp.ne.s32.totalorder %s34_s10, %s776_s18  ;;  %p782_p5 = scmp.lt.s32.totalorder %s776_s18, %s776_s18 }
   0xd   :  { %p783_p6 = por %p782_p5, %p781_p4 }
   0xf   :  { %p784_p7 = pnand %p783_p6, %p777_p3 }
  0x11   :  { %787 = shalt.err (!%p784_p7)
}
  0x12   :  { %s907_s19 = smov 64   ;;  %s908_s20 = smov 4  }
  0x13   :  { %39 = dma.hbm_to_vmem [thread:$0]  %s1103_s1, 1024, %s34_s10, [#allocation6], %s907_s19, %s907_s19, %s908_s20  }
  0x14   :  { %s909_s23 = smov [#allocation8]   ;;  %s910_s25 = smov [#allocation2]  }
  0x15   :  { %s61_s24 = sshll.u32 %s909_s23, 4  ;;  %s24_s26 = sshll.u32 %s910_s25, 4  ;;  %s62_s24 = int_to_ptr.vmem [resolvable:$true] %s61_s24  ;;  %s25_s26 = int_to_ptr.vmem [resolvable:$true] %s24_s26 }
  0x16   :  { %s788_s29 = scalar_lea.hbm %s1107_s5, 1024 }
  0x17   :  { %p789_p8 = scmp.ne.s32.totalorder %s1107_s5, %s788_s29  ;;  %p792_p9 = scmp.lt.u32.totalorder %s788_s29, %s1107_s5 }
  0x19   :  { %p794_p10 = pnand %p792_p9, %p789_p8 }
  0x1b   :  { %797 = shalt.err (!%p794_p10)
}
  0x1c   :  { %s798_s1 = scalar_lea.vmem %s62_s24, 1024  ;;  %p803_p12 = scmp.lt.s32.totalorder %s62_s24, %s62_s24 }
  0x1d   :  { %p799_p11 = scmp.ne.s32.totalorder %s62_s24, %s798_s1  ;;  %p804_p13 = scmp.lt.s32.totalorder %s798_s1, %s798_s1 }
  0x1f   :  { %p805_p0 = por %p804_p13, %p803_p12 }
  0x21   :  { %p806_p1 = pnand %p805_p0, %p799_p11 }
  0x23   :  { %809 = shalt.err (!%p806_p1)
}
  0x24   :  { %67 = dma.hbm_to_vmem [thread:$0]  %s1107_s5, 1024, %s62_s24, [#allocation9], %s907_s19, %s907_s19, %s908_s20  }
  0x25   :  { %s810_s17 = scalar_lea.hbm %s1102_s0, 64 }
  0x26   :  { %p811_p2 = scmp.ne.s32.totalorder %s1102_s0, %s810_s17  ;;  %p814_p3 = scmp.lt.u32.totalorder %s810_s17, %s1102_s0 }
  0x28   :  { %p816_p4 = pnand %p814_p3, %p811_p2 }
  0x2a   :  { %819 = shalt.err (!%p816_p4)
}
  0x2b   :  { %s820_s25 = scalar_lea.vmem %s25_s26, 64  ;;  %p825_p6 = scmp.lt.s32.totalorder %s25_s26, %s25_s26 }
  0x2c   :  { %p821_p5 = scmp.ne.s32.totalorder %s25_s26, %s820_s25  ;;  %p826_p7 = scmp.lt.s32.totalorder %s820_s25, %s820_s25 }
  0x2e   :  { %p827_p8 = por %p826_p7, %p825_p6 }
  0x30   :  { %p828_p9 = pnand %p827_p8, %p821_p5 }
  0x32   :  { %831 = shalt.err (!%p828_p9)
}
  0x33   :  { %27 = dma.hbm_to_vmem [thread:$0]  %s1102_s0, 64, %s25_s26, [#allocation3]  }
  0x34   :  { %s911_s27 = smov [#allocation7]   ;;  %s912_s29 = smov [#allocation10]  }
  0x35   :  { %s47_s28 = sshll.u32 %s911_s27, 4  ;;  %s75_s30 = sshll.u32 %s912_s29, 4  ;;  %s48_s28 = int_to_ptr.vmem [resolvable:$true] %s47_s28  ;;  %s76_s30 = int_to_ptr.vmem [resolvable:$true] %s75_s30 }
  0x36   :  { %s832_s13 = scalar_lea.hbm %s1105_s3, 1024 }
  0x37   :  { %p833_p10 = scmp.ne.s32.totalorder %s1105_s3, %s832_s13  ;;  %p836_p11 = scmp.lt.u32.totalorder %s832_s13, %s1105_s3 }
  0x39   :  { %p838_p12 = pnand %p836_p11, %p833_p10 }
  0x3b   :  { %841 = shalt.err (!%p838_p12)
}
  0x3c   :  { %s842_s0 = scalar_lea.vmem %s48_s28, 1024  ;;  %p847_p0 = scmp.lt.s32.totalorder %s48_s28, %s48_s28 }
  0x3d   :  { %p843_p13 = scmp.ne.s32.totalorder %s48_s28, %s842_s0  ;;  %p848_p1 = scmp.lt.s32.totalorder %s842_s0, %s842_s0 }
  0x3f   :  { %p849_p2 = por %p848_p1, %p847_p0 }
  0x41   :  { %p850_p3 = pnand %p849_p2, %p843_p13 }
  0x43   :  { %853 = shalt.err (!%p850_p3)
}
  0x44   :  { %53 = dma.hbm_to_vmem [thread:$0]  %s1105_s3, 1024, %s48_s28, [#allocation6], %s907_s19, %s907_s19, %s908_s20  }
  0x45   :  { %s854_s21 = scalar_lea.hbm %s1109_s7, 1024 }
  0x46   :  { %p855_p4 = scmp.ne.s32.totalorder %s1109_s7, %s854_s21  ;;  %p858_p5 = scmp.lt.u32.totalorder %s854_s21, %s1109_s7 }
  0x48   :  { %p860_p6 = pnand %p858_p5, %p855_p4 }
  0x4a   :  { %863 = shalt.err (!%p860_p6)
}
  0x4b   :  { %s864_s24 = scalar_lea.vmem %s76_s30, 1024  ;;  %p869_p8 = scmp.lt.s32.totalorder %s76_s30, %s76_s30 }
  0x4c   :  { %p865_p7 = scmp.ne.s32.totalorder %s76_s30, %s864_s24  ;;  %p870_p9 = scmp.lt.s32.totalorder %s864_s24, %s864_s24 }
  0x4e   :  { %p871_p10 = por %p870_p9, %p869_p8 }
  0x50   :  { %p872_p11 = pnand %p871_p10, %p865_p7 }
  0x52   :  { %875 = shalt.err (!%p872_p11)
}
  0x53   :  { %81 = dma.hbm_to_vmem [thread:$0]  %s1109_s7, 1024, %s76_s30, [#allocation9], %s907_s19, %s907_s19, %s908_s20  }
  0x54   :  { %898 = dma.done.wait [#allocation3], 64  }
  0x55   :  { %899 = vsyncadd [#allocation3], 4294967232 }
  0x56   :  { %900 = dma.done.wait [#allocation6], 2048  }
  0x57   :  { %901 = vsyncadd [#allocation6], 4294965248 }
  0x58   :  { %902 = dma.done.wait [#allocation9], 2048  }
  0x59   :  { %903 = vsyncadd [#allocation9], 4294965248  ;;  %v913_v0 = vmov 0.0   ;;  %vm914_vm0 = vmmov 0   ;;  %v734_v1 = vld [vmem:[#allocation5] sm:$0xff]   ;;  %v735_v2 = vld [vmem:[#allocation5 + $0x8] sm:$0xff]  }
  0x5a   :  { %644 = vmatprep.subr.bf16.mxu0 %v913_v0  ;;  %660 = vmatprep.mubr.msk.bf16.mxu0 %vm914_vm0, %v913_v0  ;;  %v736_v3 = vld [vmem:[#allocation5 + $0x10] sm:$0xff]   ;;  %v742_v4 = vld [vmem:[#allocation7] sm:$0xff]   ;;  %v737_v5 = vld [vmem:[#allocation5 + $0x18] sm:$0xff]   ;;  %s915_s11 = smov [#allocation11]  }
  0x5b   :  { %664 = vmatprep.subr.bf16.mxu1 %v913_v0  ;;  %680 = vmatprep.mubr.msk.bf16.mxu1 %vm914_vm0, %v913_v0  ;;  %v743_v6 = vld [vmem:[#allocation7 + $0x8] sm:$0xff]   ;;  %v738_v7 = vld [vmem:[#allocation5 + $0x20] sm:$0xff]   ;;  %v744_v8 = vld [vmem:[#allocation7 + $0x10] sm:$0xff]   ;;  %s561_s12 = sshll.u32 %s915_s11, 4  ;;  %s562_s12 = int_to_ptr.vmem [resolvable:$true] %s561_s12 }
  0x5c   :  { %645 = vmatpush3.bf16.msra.mxu0 %v734_v1  ;;  %665 = vmatpush3.bf16.msra.mxu1 %v742_v4  ;;  %v739_v9 = vld [vmem:[#allocation5 + $0x28] sm:$0xff]   ;;  %v745_v10 = vld [vmem:[#allocation7 + $0x18] sm:$0xff]   ;;  %v740_v11 = vld [vmem:[#allocation5 + $0x30] sm:$0xff]   ;;  %p881_p13 = scmp.lt.s32.totalorder %s562_s12, %s562_s12 }
  0x5d   :  { %646 = vmatprep.subr.bf16.mxu0 %v913_v0  ;;  %666 = vmatprep.subr.bf16.mxu1 %v913_v0  ;;  %v746_v12 = vld [vmem:[#allocation7 + $0x20] sm:$0xff]   ;;  %v741_v13 = vld [vmem:[#allocation5 + $0x38] sm:$0xff]   ;;  %v747_v14 = vld [vmem:[#allocation7 + $0x28] sm:$0xff]  }
  0x5e   :  { %v100_v15 = vld [vmem:[#allocation2] sm:$0xf]  ;;  %v748_v16 = vld [vmem:[#allocation7 + $0x30] sm:$0xff]   ;;  %v750_v18 = vld [vmem:[#allocation8] sm:$0xff]  }
  0x5f   :  { %v749_v17 = vld [vmem:[#allocation7 + $0x38] sm:$0xff]   ;;  %v751_v19 = vld [vmem:[#allocation8 + $0x8] sm:$0xff]   ;;  %v752_v20 = vld [vmem:[#allocation8 + $0x10] sm:$0xff]  }
  0x60   :  { %647 = vmatpush3.bf16.msra.mxu0 %v735_v2  ;;  %667 = vmatpush3.bf16.msra.mxu1 %v743_v6  ;;  %v753_v21 = vld [vmem:[#allocation8 + $0x18] sm:$0xff]   ;;  %v754_v22 = vld [vmem:[#allocation8 + $0x20] sm:$0xff]   ;;  %v755_v23 = vld [vmem:[#allocation8 + $0x28] sm:$0xff]  }
  0x61   :  { %648 = vmatprep.subr.bf16.mxu0 %v913_v0  ;;  %668 = vmatprep.subr.bf16.mxu1 %v913_v0  ;;  %v572_v24 = vld [vmem:[%s1104_s2] ss:$0 sm:$0xff]  ;;  %v756_v33 = vld [vmem:[#allocation8 + $0x30] sm:$0xff]   ;;  %v758_v35 = vld [vmem:[#allocation10] sm:$0xff]  }
  0x62   :  { %v757_v34 = vld [vmem:[#allocation8 + $0x38] sm:$0xff]   ;;  %v759_v36 = vld [vmem:[#allocation10 + $0x8] sm:$0xff]   ;;  %v760_v37 = vld [vmem:[#allocation10 + $0x10] sm:$0xff]  }
  0x63   :  { %v761_v38 = vld [vmem:[#allocation10 + $0x18] sm:$0xff]   ;;  %v762_v39 = vld [vmem:[#allocation10 + $0x20] sm:$0xff]   ;;  %v763_v40 = vld [vmem:[#allocation10 + $0x28] sm:$0xff]  }
  0x64   :  { %649 = vmatpush3.bf16.msra.mxu0 %v736_v3  ;;  %669 = vmatpush3.bf16.msra.mxu1 %v744_v8  ;;  %v581_v41 = vld [vmem:[%s1106_s4] ss:$0 sm:$0xff]  ;;  %v764_v50 = vld [vmem:[#allocation10 + $0x30] sm:$0xff]  }
  0x65   :  { %650 = vmatprep.subr.bf16.mxu0 %v913_v0  ;;  %670 = vmatprep.subr.bf16.mxu1 %v913_v0  ;;  %v765_v51 = vld [vmem:[#allocation10 + $0x38] sm:$0xff]  }
  0x66   :  { %v590_v52 = vld [vmem:[%s1108_s6] ss:$0 sm:$0xff]  ;;  %s876_s6 = scalar_lea.vmem %s562_s12, 128 }
  0x67   :  { %v599_v61 = vld [vmem:[%s1110_s8] ss:$0 sm:$0xff]  ;;  %p877_p12 = scmp.ne.s32.totalorder %s562_s12, %s876_s6  ;;  %p882_p0 = scmp.lt.s32.totalorder %s876_s6, %s876_s6 }
  0x68   :  { %651 = vmatpush3.bf16.msra.mxu0 %v737_v5  ;;  %671 = vmatpush3.bf16.msra.mxu1 %v745_v10 }
  0x69   :  { %652 = vmatprep.subr.bf16.mxu0 %v913_v0  ;;  %672 = vmatprep.subr.bf16.mxu1 %v913_v0  ;;  %p883_p1 = por %p882_p0, %p881_p13 }
  0x6b   :  { %p884_p2 = pnand %p883_p1, %p877_p12 }
  0x6c   :  { %653 = vmatpush3.bf16.msra.mxu0 %v738_v7  ;;  %673 = vmatpush3.bf16.msra.mxu1 %v746_v12 }
  0x6d   :  { %654 = vmatprep.subr.bf16.mxu0 %v913_v0  ;;  %674 = vmatprep.subr.bf16.mxu1 %v913_v0 }
  0x70   :  { %655 = vmatpush3.bf16.msra.mxu0 %v739_v9  ;;  %675 = vmatpush3.bf16.msra.mxu1 %v747_v14 }
  0x71   :  { %656 = vmatprep.subr.bf16.mxu0 %v913_v0  ;;  %676 = vmatprep.subr.bf16.mxu1 %v913_v0 }
  0x74   :  { %657 = vmatpush3.bf16.msra.mxu0 %v740_v11  ;;  %677 = vmatpush3.bf16.msra.mxu1 %v748_v16 }
  0x75   :  { %658 = vmatprep.subr.bf16.mxu0 %v913_v0  ;;  %678 = vmatprep.subr.bf16.mxu1 %v913_v0 }
  0x78   :  { %659 = vmatpush3.bf16.msra.mxu0 %v741_v13  ;;  %679 = vmatpush3.bf16.msra.mxu1 %v749_v17 }
  0x79   :  { %684 = vmatprep.subr.bf16.mxu0 %v913_v0  ;;  %704 = vmatprep.subr.bf16.mxu1 %v913_v0 }
  0x7b   :  { %661 = vmatmul.mubr.bf16.vlgmr.msra.gmra.mrb[0].mxu0 %v100_v15 }
  0x7c   :  { %700 = vmatprep.mubr.msk.bf16.mxu0 %vm914_vm0, %v913_v0  ;;  %685 = vmatpush3.bf16.msra.mxu0 %v750_v18 }
  0x7d   :  { %686 = vmatprep.subr.bf16.mxu0 %v913_v0 }
  0x80   :  { %687 = vmatpush3.bf16.msra.mxu0 %v751_v19 }
  0x81   :  { %688 = vmatprep.subr.bf16.mxu0 %v913_v0 }
  0x84   :  { %689 = vmatpush3.bf16.msra.mxu0 %v752_v20 }
  0x85   :  { %690 = vmatprep.subr.bf16.mxu0 %v913_v0 }
  0x88   :  { %691 = vmatpush3.bf16.msra.mxu0 %v753_v21 }
  0x89   :  { %692 = vmatprep.subr.bf16.mxu0 %v913_v0 }
  0x8c   :  { %693 = vmatpush3.bf16.msra.mxu0 %v754_v22 }
  0x8d   :  { %694 = vmatprep.subr.bf16.mxu0 %v913_v0 }
  0x90   :  { %695 = vmatpush3.bf16.msra.mxu0 %v755_v23 }
  0x91   :  { %696 = vmatprep.subr.bf16.mxu0 %v913_v0 }
  0x94   :  { %697 = vmatpush3.bf16.msra.mxu0 %v756_v33 }
  0x95   :  { %698 = vmatprep.subr.bf16.mxu0 %v913_v0 }
  0x98   :  { %699 = vmatpush3.bf16.msra.mxu0 %v757_v34 }
 0x14e   :  { %v206_v25 = vpop.f32.mrb[0].mxu0 }
 0x14f   :  { %v207_v26 = vadd.f32 %v572_v24, %v206_v25  ;;  %v662_v27 = vpop.f32.mrb[1].mxu0 }
 0x150   :  { %v209_v28 = vpop.f32.mrb[2].mxu0 }
 0x151   :  { %v212_v29 = vmul.f32 0.01, %v207_v26  ;;  %v663_v30 = vpop.f32.mrb[3].mxu0 }
 0x153   :  { %v213_v31 = vmax.f32 %v207_v26, %v212_v29 }
 0x155   :  { %v231_v32 = vpack.c.bf16 %v213_v31, %v213_v31 }
 0x157   :  { %681 = vmatmul.mubr.bf16.vlgmr.msra.gmra.mrb[0].mxu1 %v231_v32 }
 0x158   :  { %720 = vmatprep.mubr.msk.bf16.mxu1 %vm914_vm0, %v913_v0  ;;  %705 = vmatpush3.bf16.msra.mxu1 %v758_v35 }
 0x159   :  { %706 = vmatprep.subr.bf16.mxu1 %v913_v0 }
 0x15c   :  { %707 = vmatpush3.bf16.msra.mxu1 %v759_v36 }
 0x15d   :  { %708 = vmatprep.subr.bf16.mxu1 %v913_v0 }
 0x160   :  { %709 = vmatpush3.bf16.msra.mxu1 %v760_v37 }
 0x161   :  { %710 = vmatprep.subr.bf16.mxu1 %v913_v0 }
 0x164   :  { %711 = vmatpush3.bf16.msra.mxu1 %v761_v38 }
 0x165   :  { %712 = vmatprep.subr.bf16.mxu1 %v913_v0 }
 0x168   :  { %713 = vmatpush3.bf16.msra.mxu1 %v762_v39 }
 0x169   :  { %714 = vmatprep.subr.bf16.mxu1 %v913_v0 }
 0x16c   :  { %715 = vmatpush3.bf16.msra.mxu1 %v763_v40 }
 0x16d   :  { %716 = vmatprep.subr.bf16.mxu1 %v913_v0 }
 0x170   :  { %717 = vmatpush3.bf16.msra.mxu1 %v764_v50 }
 0x171   :  { %718 = vmatprep.subr.bf16.mxu1 %v913_v0 }
 0x174   :  { %719 = vmatpush3.bf16.msra.mxu1 %v765_v51 }
 0x22a   :  { %v320_v42 = vpop.f32.mrb[0].mxu1 }
 0x22b   :  { %v321_v43 = vadd.f32 %v581_v41, %v320_v42  ;;  %v682_v44 = vpop.f32.mrb[1].mxu1 }
 0x22c   :  { %v323_v45 = vpop.f32.mrb[2].mxu1 }
 0x22d   :  { %v326_v46 = vmul.f32 0.01, %v321_v43  ;;  %v683_v47 = vpop.f32.mrb[3].mxu1 }
 0x22f   :  { %v327_v48 = vmax.f32 %v321_v43, %v326_v46 }
 0x231   :  { %v345_v49 = vpack.c.bf16 %v327_v48, %v327_v48 }
 0x233   :  { %701 = vmatmul.mubr.bf16.vlgmr.msra.gmra.mrb[4].mxu0 %v345_v49 }
 0x306   :  { %v434_v53 = vpop.f32.mrb[4].mxu0 }
 0x307   :  { %v435_v54 = vadd.f32 %v590_v52, %v434_v53  ;;  %v702_v55 = vpop.f32.mrb[5].mxu0 }
 0x308   :  { %v437_v56 = vpop.f32.mrb[6].mxu0 }
 0x309   :  { %v440_v57 = vmul.f32 0.01, %v435_v54  ;;  %v703_v58 = vpop.f32.mrb[7].mxu0 }
 0x30b   :  { %v441_v59 = vmax.f32 %v435_v54, %v440_v57 }
 0x30d   :  { %v459_v60 = vpack.c.bf16 %v441_v59, %v441_v59 }
 0x30f   :  { %721 = vmatmul.mubr.bf16.vlgmr.msra.gmra.mrb[4].mxu1 %v459_v60 }
 0x3e2   :  { %v548_v62 = vpop.f32.mrb[4].mxu1 }
 0x3e3   :  { %v549_v63 = vadd.f32 %v599_v61, %v548_v62  ;;  %v722_v0 = vpop.f32.mrb[5].mxu1 }
 0x3e4   :  { %v551_v1 = vpop.f32.mrb[6].mxu1 }
 0x3e5   :  { %554 = vst [vmem:[#allocation11] sm:$0xff] %v549_v63  ;;  %v723_v2 = vpop.f32.mrb[7].mxu1 }
 0x3e6   :  { %887 = shalt.err (!%p884_p2)
}
 0x3e7   :  { %s888_s8 = scalar_lea.hbm %s1111_s9, 128 }
 0x3e8   :  { %p889_p3 = scmp.ne.s32.totalorder %s1111_s9, %s888_s8  ;;  %p892_p4 = scmp.lt.u32.totalorder %s888_s8, %s1111_s9 }
 0x3ea   :  { %p894_p5 = pnand %p892_p4, %p889_p3 }
 0x3ec   :  { %897 = shalt.err (!%p894_p5)
}
 0x3ed   :  { %564 = dma.vmem_to_hbm [thread:$0]  %s562_s12, 128, %s1111_s9, [#allocation4]  }
 0x3ee   :  { %904 = dma.done.wait [#allocation4], 128  }
 0x3ef   :  { %905 = vsyncadd [#allocation4], 4294967168 }
 0x3f0   :  { %568 = vsyncpa [#allocation3], 1 }
 0x3f1   :  { %569 = vsyncpa [#allocation6], 1 }
 0x3f2   :  { %570 = vsyncpa [#allocation9], 1 }
 0x3f3   :  { %571 = vsyncpa [#allocation4], 1 }

</bundles_post_ra>
